<compile_context>
chip_gen: v5e
topology: v5e:2x2
jax: 0.10.0
libtpu: 0.0.40
codegen_flags: <defaults>
</compile_context>

<pallas_src>
import functools

import numpy as np
import jax
import jax.numpy as jnp
from jax.experimental import pallas as pl
from jax.experimental.pallas import tpu as pltpu

PAD = 3          # first_padding (standard ResNet stem)
KH = KW = 7
STRIDE = 2
BN_EPS = 1e-5
LANES = 128


# --------------------------------------------------------------------------
# Fused kernel: conv-as-matmul + BN bias + ReLU + maxpool(3,2,1), one image/step
# --------------------------------------------------------------------------
def _fused_stem_kernel(p_ref, w_ref, b_ref, o_ref, conv_ref, hmax_ref):
    # p_ref   : (1, Ho*Wo, K)      bf16  im2col rows of one image
    # w_ref   : (K, Cp)            bf16  BN-scale-folded weights, Cout zero-padded to Cp
    # b_ref   : (1, Cp)            f32   BN bias
    # o_ref   : (1, Hp, Wp, Cout)  f32   pooled output (NHWC)
    # conv_ref: (Ho+1, Wo, Cp)     f32   scratch; row 0 = zero top pool-padding
    # hmax_ref: (Hp, Wo+1, Cp)     f32   scratch; col 0 = zero left pool-padding
    _, Hp, Wp, Cout = o_ref.shape
    Ho = conv_ref.shape[0] - 1
    Wo = conv_ref.shape[1]
    Cp = conv_ref.shape[2]

    # ---- conv: one big lane-dense MXU matmul with f32 accumulation ----------
    acc = jnp.dot(p_ref[0], w_ref[...], preferred_element_type=jnp.float32)
    y = jnp.maximum(acc + b_ref[...], 0.0)               # BN bias + ReLU, f32

    # ---- max-pool 3x3 / s2 / p1  (post-ReLU >= 0  =>  0-pad == -inf pad) ----
    conv_ref[0] = jnp.zeros((Wo, Cp), jnp.float32)        # "row -1" padding
    conv_ref[pl.ds(1, Ho)] = y.reshape(Ho, Wo, Cp)

    # pass 1: max over the 3 window rows; padded-row coords are 2hp, 2hp+1, 2hp+2
    r0 = conv_ref[pl.ds(0, Hp, stride=2)]
    r1 = conv_ref[pl.ds(1, Hp, stride=2)]
    r2 = conv_ref[pl.ds(2, Hp, stride=2)]
    hmax = jnp.maximum(jnp.maximum(r0, r1), r2)           # (Hp, Wo, Cp)

    hmax_ref[:, 0:1, :] = jnp.zeros((Hp, 1, Cp), jnp.float32)   # "col -1" padding
    hmax_ref[:, pl.ds(1, Wo), :] = hmax

    # pass 2: max over the 3 window cols; padded-col coords are 2wp, 2wp+1, 2wp+2
    c0 = hmax_ref[:, pl.ds(0, Wp, stride=2), :]
    c1 = hmax_ref[:, pl.ds(1, Wp, stride=2), :]
    c2 = hmax_ref[:, pl.ds(2, Wp, stride=2), :]
    pooled = jnp.maximum(jnp.maximum(c0, c1), c2)         # (Hp, Wp, Cp)

    o_ref[0] = pooled[:, :, :Cout].astype(o_ref.dtype)    # drop channel padding


# --------------------------------------------------------------------------
# Glue: im2col, BN folding, layout conversion
# --------------------------------------------------------------------------
def _im2col(x_nhwc, kh, kw, stride, pad, dtype):
    N, H, W, Cin = x_nhwc.shape
    Ho = (H + 2 * pad - kh) // stride + 1
    Wo = (W + 2 * pad - kw) // stride + 1
    xp = jnp.pad(x_nhwc, ((0, 0), (pad, pad), (pad, pad), (0, 0)))
    cols = []
    for dy in range(kh):
        for dx in range(kw):
            cols.append(jax.lax.slice(
                xp,
                (0, dy, dx, 0),
                (N, dy + (Ho - 1) * stride + 1, dx + (Wo - 1) * stride + 1, Cin),
                (1, stride, stride, 1)))
    patches = jnp.stack(cols, axis=3)                     # (N, Ho, Wo, kh*kw, Cin)
    patches = patches.reshape(N, Ho * Wo, kh * kw * Cin).astype(dtype)
    return patches, (Ho, Wo)


@jax.jit
def initial_block(x_nchw, conv_w, gamma, beta, run_mean, run_var, eps=BN_EPS):
    """Fused ResNet stem: conv7x7/s2/p3 -> BN (inference) -> ReLU -> maxpool3x3/s2/p1.
    NCHW in / NCHW out, matching the PyTorch module."""
    N, Cin, H, W = x_nchw.shape
    Cout = conv_w.shape[0]
    assert H % 4 == 0 and W % 4 == 0, "stem expects H, W divisible by 4"

    compute_dtype = jnp.bfloat16     # matmul operands; f32 MXU accumulation + f32 epilogue

    x_nhwc = jnp.transpose(x_nchw, (0, 2, 3, 1)).astype(jnp.float32)
    patches, (Ho, Wo) = _im2col(x_nhwc, KH, KW, STRIDE, PAD, compute_dtype)
    Hp, Wp = Ho // 2, Wo // 2
    K = KH * KW * Cin
    Cp = ((Cout + LANES - 1) // LANES) * LANES            # lane-dense matmul width

    # fold BN (inference mode) into weights / bias;  torch weight is [Cout, Cin, kh, kw]
    scale = gamma / jnp.sqrt(run_var + eps)
    bias = beta - run_mean * scale
    w_mat = jnp.transpose(conv_w, (2, 3, 1, 0)).reshape(K, Cout).astype(jnp.float32)
    w_mat = (w_mat * scale[None, :]).astype(compute_dtype)
    w_mat = jnp.pad(w_mat, ((0, 0), (0, Cp - Cout)))
    bias = jnp.pad(bias.astype(jnp.float32), (0, Cp - Cout)).reshape(1, Cp)

    pooled = pl.pallas_call(
        _fused_stem_kernel,
        out_shape=jax.ShapeDtypeStruct((N, Hp, Wp, Cout), jnp.float32),
        grid=(N,),
        in_specs=[
            pl.BlockSpec((1, Ho * Wo, K), lambda n: (n, 0, 0)),
            pl.BlockSpec((K, Cp), lambda n: (0, 0)),
            pl.BlockSpec((1, Cp), lambda n: (0, 0)),
        ],
        out_specs=pl.BlockSpec((1, Hp, Wp, Cout), lambda n: (n, 0, 0, 0)),
        scratch_shapes=[
            pltpu.VMEM((Ho + 1, Wo, Cp), jnp.float32),    # conv+BN+ReLU (+ top pad row)
            pltpu.VMEM((Hp, Wo + 1, Cp), jnp.float32),    # row-pooled   (+ left pad col)
        ],
        compiler_params=pltpu.CompilerParams(
            dimension_semantics=("parallel",),
        ),
    )(patches, w_mat, bias)

    return jnp.transpose(pooled, (0, 3, 1, 2))            # NHWC -> NCHW


# --------------------------------------------------------------------------
# Pure-JAX reference (for correctness check)
# --------------------------------------------------------------------------
def reference(x, w, gamma, beta, mean, var, eps=BN_EPS):
    y = jax.lax.conv_general_dilated(
        x, w, window_strides=(STRIDE, STRIDE), padding=[(PAD, PAD), (PAD, PAD)],
        dimension_numbers=("NCHW", "OIHW", "NCHW"),
        precision=jax.lax.Precision.HIGHEST)
    scale = gamma / jnp.sqrt(var + eps)
    bias = beta - mean * scale
    y = y * scale[None, :, None, None] + bias[None, :, None, None]
    y = jnp.maximum(y, 0.0)
    y = jax.lax.reduce_window(y, -jnp.inf, jax.lax.max,
                              window_dimensions=(1, 1, 3, 3),
                              window_strides=(1, 1, 2, 2),
                              padding=((0, 0), (0, 0), (1, 1), (1, 1)))
    return y


if __name__ == "__main__":
    key = jax.random.PRNGKey(0)
    k1, k2, k3, k4, k5, k6 = jax.random.split(key, 6)

    N, Cin, H, W = 2, 3, 32, 32
    inplanes = 16

    x = jax.random.normal(k1, (N, Cin, H, W), jnp.float32)
    conv_w = jax.random.normal(k2, (inplanes, Cin, KH, KW), jnp.float32) * 0.05
    gamma = 1.0 + 0.1 * jax.random.normal(k3, (inplanes,), jnp.float32)
    beta = 0.1 * jax.random.normal(k4, (inplanes,), jnp.float32)
    run_mean = 0.1 * jax.random.normal(k5, (inplanes,), jnp.float32)
    run_var = jax.random.uniform(k6, (inplanes,), jnp.float32, minval=0.5, maxval=1.5)

    out = initial_block(x, conv_w, gamma, beta, run_mean, run_var)
    out = jax.block_until_ready(out)

    ref = reference(x, conv_w, gamma, beta, run_mean, run_var)
    assert out.shape == ref.shape == (N, inplanes, 8, 8), (out.shape, ref.shape)
    # tolerance reflects bf16 quantization of the matmul operands (accumulation is f32)
    np.testing.assert_allclose(np.asarray(out), np.asarray(ref), rtol=2e-2, atol=2e-2)
    print("KERNEL_OK")
</pallas_src>

<mosaic_0001>
module attributes {stable_mosaic.version = 11 : i64} {
  func.func @_fused_stem_kernel(%arg0: i32, %arg1: memref<1x256x147xbf16, #tpu.memory_space<vmem>>, %arg2: memref<147x128xbf16, #tpu.memory_space<vmem>>, %arg3: memref<1x128xf32, #tpu.memory_space<vmem>>, %arg4: memref<1x8x8x16xf32, #tpu.memory_space<vmem>>, %arg5: memref<17x16x128xf32, #tpu.memory_space<vmem>>, %arg6: memref<8x17x128xf32, #tpu.memory_space<vmem>>) attributes {dimension_semantics = [#tpu.dimension_semantics<parallel>], iteration_bounds = array<i64: 2>, scalar_prefetch = 0 : i64, scratch_operands = 2 : i64, tpu.core_type = #tpu.core_type<tc>, window_params = [{transform_indices = @transform_0, window_bounds = array<i64: 1, 256, 147>}, {pipeline_mode = #tpu.pipeline_mode<synchronous>, transform_indices = @transform_1, window_bounds = array<i64: 147, 128>}, {pipeline_mode = #tpu.pipeline_mode<synchronous>, transform_indices = @transform_2, window_bounds = array<i64: 1, 128>}, {transform_indices = @transform_3, window_bounds = array<i64: 1, 8, 8, 16>}]} {
    %c0 = arith.constant 0 : index
    %c0_0 = arith.constant 0 : index
    %c0_1 = arith.constant 0 : index
    %0 = vector.load %arg1[%c0, %c0_0, %c0_1] : memref<1x256x147xbf16, #tpu.memory_space<vmem>>, vector<1x256x147xbf16>
    %1 = vector.shape_cast %0 : vector<1x256x147xbf16> to vector<256x147xbf16>
    %c0_2 = arith.constant 0 : index
    %c0_3 = arith.constant 0 : index
    %2 = vector.load %arg2[%c0_2, %c0_3] : memref<147x128xbf16, #tpu.memory_space<vmem>>, vector<147x128xbf16>
    %cst = arith.constant dense<0.000000e+00> : vector<256x128xf32>
    %3 = tpu.matmul %1, %2, %cst {dimension_numbers = #tpu.dot_dimension_numbers<[1], [0], [0], [1], [0, 0, 1, 1], [], []>} : vector<256x147xbf16>, vector<147x128xbf16>, vector<256x128xf32> -> vector<256x128xf32>
    %c0_4 = arith.constant 0 : index
    %c0_5 = arith.constant 0 : index
    %4 = vector.load %arg3[%c0_4, %c0_5] : memref<1x128xf32, #tpu.memory_space<vmem>>, vector<1x128xf32>
    %5 = vector.broadcast %4 : vector<1x128xf32> to vector<256x128xf32>
    %6 = arith.addf %3, %5 : vector<256x128xf32>
    %cst_6 = arith.constant 0.000000e+00 : f32
    %7 = vector.broadcast %cst_6 : f32 to vector<256x128xf32>
    %8 = arith.maximumf %6, %7 : vector<256x128xf32>
    %cst_7 = arith.constant 0.000000e+00 : f32
    %9 = vector.broadcast %cst_7 : f32 to vector<16x128xf32>
    %c0_8 = arith.constant 0 : index
    %c0_9 = arith.constant 0 : index
    %c0_10 = arith.constant 0 : index
    %10 = vector.load %arg5[%c0_8, %c0_9, %c0_10] : memref<17x16x128xf32, #tpu.memory_space<vmem>>, vector<1x16x128xf32>
    %11 = vector.shape_cast %10 : vector<1x16x128xf32> to vector<16x128xf32>
    %12 = vector.shape_cast %9 : vector<16x128xf32> to vector<1x16x128xf32>
    tpu.vector_store %arg5[%c0_8, %c0_9, %c0_10], %12 {strides = array<i32>} : memref<17x16x128xf32, #tpu.memory_space<vmem>>, vector<1x16x128xf32>,
    %13 = vector.shape_cast %8 : vector<256x128xf32> to vector<16x16x128xf32>
    %c1 = arith.constant 1 : index
    %c0_11 = arith.constant 0 : index
    %c0_12 = arith.constant 0 : index
    %14 = vector.load %arg5[%c1, %c0_11, %c0_12] : memref<17x16x128xf32, #tpu.memory_space<vmem>>, vector<16x16x128xf32>
    tpu.vector_store %arg5[%c1, %c0_11, %c0_12], %13 {strides = array<i32>} : memref<17x16x128xf32, #tpu.memory_space<vmem>>, vector<16x16x128xf32>,
    %c0_13 = arith.constant 0 : index
    %c0_14 = arith.constant 0 : index
    %c0_15 = arith.constant 0 : index
    %15 = tpu.strided_load %arg5[%c0_13, %c0_14, %c0_15] {strides = array<i32: 2, 1, 1>} : memref<17x16x128xf32, #tpu.memory_space<vmem>>, vector<8x16x128xf32>
    %c1_16 = arith.constant 1 : index
    %c0_17 = arith.constant 0 : index
    %c0_18 = arith.constant 0 : index
    %16 = tpu.strided_load %arg5[%c1_16, %c0_17, %c0_18] {strides = array<i32: 2, 1, 1>} : memref<17x16x128xf32, #tpu.memory_space<vmem>>, vector<8x16x128xf32>
    %c2 = arith.constant 2 : index
    %c0_19 = arith.constant 0 : index
    %c0_20 = arith.constant 0 : index
    %17 = tpu.strided_load %arg5[%c2, %c0_19, %c0_20] {strides = array<i32: 2, 1, 1>} : memref<17x16x128xf32, #tpu.memory_space<vmem>>, vector<8x16x128xf32>
    %18 = arith.maximumf %15, %16 : vector<8x16x128xf32>
    %19 = arith.maximumf %18, %17 : vector<8x16x128xf32>
    %cst_21 = arith.constant 0.000000e+00 : f32
    %20 = vector.broadcast %cst_21 : f32 to vector<8x1x128xf32>
    %c0_22 = arith.constant 0 : index
    %c0_23 = arith.constant 0 : index
    %c0_24 = arith.constant 0 : index
    %21 = vector.load %arg6[%c0_22, %c0_23, %c0_24] : memref<8x17x128xf32, #tpu.memory_space<vmem>>, vector<8x1x128xf32>
    tpu.vector_store %arg6[%c0_22, %c0_23, %c0_24], %20 {strides = array<i32>} : memref<8x17x128xf32, #tpu.memory_space<vmem>>, vector<8x1x128xf32>,
    %c0_25 = arith.constant 0 : index
    %c1_26 = arith.constant 1 : index
    %c0_27 = arith.constant 0 : index
    %22 = vector.load %arg6[%c0_25, %c1_26, %c0_27] : memref<8x17x128xf32, #tpu.memory_space<vmem>>, vector<8x16x128xf32>
    tpu.vector_store %arg6[%c0_25, %c1_26, %c0_27], %19 {strides = array<i32>} : memref<8x17x128xf32, #tpu.memory_space<vmem>>, vector<8x16x128xf32>,
    %c0_28 = arith.constant 0 : index
    %c0_29 = arith.constant 0 : index
    %c0_30 = arith.constant 0 : index
    %23 = tpu.strided_load %arg6[%c0_28, %c0_29, %c0_30] {strides = array<i32: 1, 2, 1>} : memref<8x17x128xf32, #tpu.memory_space<vmem>>, vector<8x8x128xf32>
    %c0_31 = arith.constant 0 : index
    %c1_32 = arith.constant 1 : index
    %c0_33 = arith.constant 0 : index
    %24 = tpu.strided_load %arg6[%c0_31, %c1_32, %c0_33] {strides = array<i32: 1, 2, 1>} : memref<8x17x128xf32, #tpu.memory_space<vmem>>, vector<8x8x128xf32>
    %c0_34 = arith.constant 0 : index
    %c2_35 = arith.constant 2 : index
    %c0_36 = arith.constant 0 : index
    %25 = tpu.strided_load %arg6[%c0_34, %c2_35, %c0_36] {strides = array<i32: 1, 2, 1>} : memref<8x17x128xf32, #tpu.memory_space<vmem>>, vector<8x8x128xf32>
    %26 = arith.maximumf %23, %24 : vector<8x8x128xf32>
    %27 = arith.maximumf %26, %25 : vector<8x8x128xf32>
    %28 = vector.extract_strided_slice %27 {offsets = [0, 0, 0], sizes = [8, 8, 16], strides = [1, 1, 1]} : vector<8x8x128xf32> to vector<8x8x16xf32>
    %c0_37 = arith.constant 0 : index
    %c0_38 = arith.constant 0 : index
    %c0_39 = arith.constant 0 : index
    %c0_40 = arith.constant 0 : index
    %29 = vector.load %arg4[%c0_37, %c0_38, %c0_39, %c0_40] : memref<1x8x8x16xf32, #tpu.memory_space<vmem>>, vector<1x8x8x16xf32>
    %30 = vector.shape_cast %29 : vector<1x8x8x16xf32> to vector<8x8x16xf32>
    %31 = vector.shape_cast %28 : vector<8x8x16xf32> to vector<1x8x8x16xf32>
    tpu.vector_store %arg4[%c0_37, %c0_38, %c0_39, %c0_40], %31 {strides = array<i32>} : memref<1x8x8x16xf32, #tpu.memory_space<vmem>>, vector<1x8x8x16xf32>,
    return
  }
  func.func @transform_0(%arg0: i32) -> (i32, i32, i32) {
    %c0_i32 = arith.constant 0 : i32
    %c0_i32_0 = arith.constant 0 : i32
    %c0_i32_1 = arith.constant 0 : i32
    return %arg0, %c0_i32, %c0_i32_0 : i32, i32, i32
  }
  func.func @transform_1(%arg0: i32) -> (i32, i32) {
    %c0_i32 = arith.constant 0 : i32
    %c0_i32_0 = arith.constant 0 : i32
    %c0_i32_1 = arith.constant 0 : i32
    return %c0_i32, %c0_i32_0 : i32, i32
  }
  func.func @transform_2(%arg0: i32) -> (i32, i32) {
    %c0_i32 = arith.constant 0 : i32
    %c0_i32_0 = arith.constant 0 : i32
    %c0_i32_1 = arith.constant 0 : i32
    return %c0_i32, %c0_i32_0 : i32, i32
  }
  func.func @transform_3(%arg0: i32) -> (i32, i32, i32, i32) {
    %c0_i32 = arith.constant 0 : i32
    %c0_i32_0 = arith.constant 0 : i32
    %c0_i32_1 = arith.constant 0 : i32
    %c0_i32_2 = arith.constant 0 : i32
    return %arg0, %c0_i32, %c0_i32_0, %c0_i32_1 : i32, i32, i32, i32
  }
}

</mosaic_0001>

<bundles_post_ra>
// kernel: initial_block.1
= control target key start
LH: loop header
LB: loop body
LE: loop exit
PB: predicated region body
PF: predicated region fallthrough
CT: control target
= control target key end

     0   :  { %8 = vsyncpa [#allocation5], 0  ;;  %s1707_s0 = inlined_call_operand.vmem [shape: bf16[2,256,147], index: 0, kind: input, shape index: {}]   ;;  %s1708_s1 = inlined_call_operand.vmem [shape: bf16[147,128], index: 1, kind: input, shape index: {}]   ;;  %s1709_s2 = inlined_call_operand.vmem [shape: f32[1,128], index: 2, kind: input, shape index: {}]   ;;  %s1710_s3 = inlined_call_operand.hbm [shape: f32[2,8,8,16], index: 3, kind: output, shape index: {}]  }
   0x1   :  { %10 = vsyncpa [#allocation5 + $0x1], 0  ;;  %s1359_s12 = smov 0   ;;  %s1361_s13 = smov 0  }
   0x2   :  { %s1363_s14 = smov 0   ;;  %s1365_s15 = smov 0  }
   0x3 LB: > { %s1380_s16 = sadd.s32 4294967295, %s1333_s15   ;;  %s982_s17 = sadd.s32 4294967294, %s1333_s15   ;;  %s1333_s15 = sphi %s1365_s15, %s1716_s15   ;;  %s1329_s14 = sphi %s1363_s14, %s1715_s14   ;;  %s1325_s13 = sphi %s1361_s13, %s1714_s13   ;;  %s1321_s12 = sphi %s1359_s12, %s1713_s12  }
   0x4   : > { %s1384_s18 = sadd.s32 1, %s1333_s15   ;;  %s91_s19 = sadd.s32 1, %s1329_s14 }
   0x5   : > { %s88_s20 = ssub.s32 %s1333_s15, %s1384_s18  ;;  %p101_p0 = scmp.ne.s32.totalorder %s1329_s14, %s1325_s13 }
   0x6   : > { %p89_p1 = scmp.eq.s32.totalorder %s88_s20, 0  ;;  %p102_p2 = scmp.eq.s32.totalorder %s1380_s16, 1 }
   0x7   : > { %p107_p3 = scmp.ne.s32.totalorder %s1325_s13, %s1321_s12  ;;  %p108_p4 = scmp.eq.s32.totalorder %s982_s17, 1 }
   0x8   : > { %s1395_s21 = scalar_select %p89_p1, %s1329_s14, %s91_s19  }
   0x9   : > { %p1397_p5 = por %p102_p2, %p101_p0  ;;  %p1401_p6 = por %p108_p4, %p107_p3 }
   0xa   : > { %p985_p7 = scmp.ge.s32.totalorder %s1333_s15, 1  ;;  %p140_p8 = scmp.lt.s32.totalorder %s1333_s15, 3 }
   0xc   : > { %p141_p9 = pnand %p985_p7, %p140_p8 }
   0xd   : > { %p164_p10 = scmp.lt.s32.totalorder (!%p141_p9), %s1380_s16, 1  ;;  %s161_s6 = sand.u32 (!%p141_p9), 1, %s1325_s13  }
   0xe   : > { %144 = sbr.rel (%p141_p9) target bundleno = 327 (0x147), region = 32  ;;  %s986_s7 = sshll.u32 (!%p141_p9), %s161_s6, 6 }
   0xf   : > { %s1547_s8 = scalar_lea.vmem (!%p141_p9), [#allocation4], %s986_s7  ;;  %s905_s20 = scalar_lea.sflag (!%p141_p9), [#allocation5], %s161_s6 }
  0x10   : > { %s917_s19 = sshll.u32 (!%p141_p9), %s1547_s8, 4  ;;  %s1291_s28 = scalar_lea.hbm (!%p141_p9), %s1710_s3, 128  ;;  %s918_s19 = int_to_ptr.vmem [resolvable:$true] %s917_s19 }
  0x13   : > { %v1214_v0 = vld [vmem:[%s1708_s1 + $0x38] sm:$0xff]  ;;  %v220_v1 = vld [vmem:[%s1708_s1 + $0x48] sm:$0x3]  ;;  %vm475_vm0 = vcmask 1040384   ;;  %vm476_vm1 = vcmask 1041408   ;;  %v1213_v3 = vld [vmem:[%s1708_s1 + $0x30] sm:$0xff] }
  0x14   : > { %v406_v2 = vunpack.c.l.b16 %v220_v1  ;;  %482 = vmatpush.bf16.msra.mxu0 %v1214_v0  ;;  %1217 = vmatpush.bf16.msra.mxu2 %v1214_v0  ;;  %v1335_v4 = vmov 65535   ;;  %s165_s30 = scalar_select %p164_p10, %s1380_s16, 1  ;;  %v1212_v9 = vld [vmem:[%s1708_s1 + $0x28] sm:$0xff]  ;;  %v1215_v10 = vld [vmem:[%s1708_s1 + $0x40] sm:$0xff]  ;;  %vm426_vm2 = vcmask 154624   ;;  %v1210_v18 = vld [vmem:[%s1708_s1 + $0x18] sm:$0xff] }
  0x15   : > { %v477_v5 = vsel %vm475_vm0, 4294967295, %v1335_v4  ;;  %v1211_v15 = vld [vmem:[%s1708_s1 + $0x20] sm:$0xff]  ;;  %v1209_v19 = vld [vmem:[%s1708_s1 + $0x10] sm:$0xff]  ;;  %v1208_v20 = vld [vmem:[%s1708_s1 + $0x8] sm:$0xff]  ;;  %vm895_vm3 = vcmask 130048  }
  0x16   : > { %v416_v6 = vpack.c.b16 %v406_v2, %v406_v2  ;;  %v478_v7 = vsel %vm476_vm1, %v477_v5, 0  ;;  %s1174_s4 = sshll.u32 %s165_s30, 8  ;;  %v1207_v26 = vld [vmem:[%s1708_s1] sm:$0xff] }
  0x17   : > { %s1424_s9 = scalar_lea.vmem %s1707_s0, %s1174_s4 }
  0x18   : > { %v480_v8 = vand.u32 %v478_v7, %v416_v6  ;;  %483 = vmatpush.bf16.msra.mxu0 %v1213_v3  ;;  %1218 = vmatpush.bf16.msra.mxu2 %v1213_v3  ;;  %v1175_v11 = vld [vmem:[%s1424_s9 + $0x4] sm:$0xf]  ;;  %v993_v12 = vld [vmem:[%s1424_s9 + $0x8] sm:$0xf0]  ;;  %v1193_v13 = vld [vmem:[%s1424_s9 + $0x94] sm:$0xf] }
  0x19   : > { %v996_v14 = vor.u32 %v1175_v11, %v993_v12  ;;  %v1065_v16 = vld [vmem:[%s1424_s9 + $0x98] sm:$0xf0]  ;;  %v1177_v21 = vld [vmem:[%s1424_s9 + $0x14] sm:$0xf]  ;;  %v1195_v23 = vld [vmem:[%s1424_s9 + $0xa4] sm:$0xf] }
  0x1a   : > { %577 = vmatpush.bf16.msra.mxu1 %v480_v8  ;;  %1225 = vmatpush.bf16.msra.mxu3 %v480_v8  ;;  %v1068_v17 = vor.u32 %v1193_v13, %v1065_v16  ;;  %v1001_v22 = vld [vmem:[%s1424_s9 + $0x18] sm:$0xf0]  ;;  %v1073_v24 = vld [vmem:[%s1424_s9 + $0xa8] sm:$0xf0]  ;;  %v991_v27 = vld [vmem:[%s1424_s9] sm:$0xf] }
  0x1b   : > { %v1004_v25 = vor.u32 %v1177_v21, %v1001_v22  ;;  %v1176_v28 = vld [vmem:[%s1424_s9 + $0x4] sm:$0xf0]  ;;  %v1055_v29 = vld [vmem:[%s1424_s9 + $0x80] sm:$0xf]  ;;  %v1076_v31 = vor.u32 %v1195_v23, %v1073_v24  ;;  %v1179_v34 = vld [vmem:[%s1424_s9 + $0x24] sm:$0xf] }
  0x1c   : > { %484 = vmatpush.bf16.msra.mxu0 %v1212_v9  ;;  %1219 = vmatpush.bf16.msra.mxu2 %v1212_v9  ;;  %v1192_v30 = vld [vmem:[%s1424_s9 + $0x84] sm:$0xf0]  ;;  %v992_v32 = vor.u32 %v1176_v28, %v991_v27  ;;  %v1009_v35 = vld [vmem:[%s1424_s9 + $0x28] sm:$0xf0]  ;;  %v1197_v36 = vld [vmem:[%s1424_s9 + $0xb4] sm:$0xf] }
  0x1d   : > { %v1056_v33 = vor.u32 %v1192_v30, %v1055_v29  ;;  %v1081_v37 = vld [vmem:[%s1424_s9 + $0xb8] sm:$0xf0]  ;;  %v1012_v38 = vor.u32 %v1179_v34, %v1009_v35  ;;  %v999_v39 = vld [vmem:[%s1424_s9 + $0x10] sm:$0xf]  ;;  %v1178_v40 = vld [vmem:[%s1424_s9 + $0x14] sm:$0xf0] }
  0x1e   : > { %578 = vmatpush.bf16.msra.mxu1 %v1215_v10  ;;  %1226 = vmatpush.bf16.msra.mxu3 %v1215_v10  ;;  %v1063_v41 = vld [vmem:[%s1424_s9 + $0x90] sm:$0xf]  ;;  %v1194_v42 = vld [vmem:[%s1424_s9 + $0x94] sm:$0xf0]  ;;  %v1084_v43 = vor.u32 %v1197_v36, %v1081_v37  ;;  %v1000_v44 = vor.u32 %v1178_v40, %v999_v39  ;;  %v1181_v46 = vld [vmem:[%s1424_s9 + $0x34] sm:$0xf] }
  0x1f   : > { %v1064_v45 = vor.u32 %v1194_v42, %v1063_v41  ;;  %v1017_v47 = vld [vmem:[%s1424_s9 + $0x38] sm:$0xf0]  ;;  %v1199_v48 = vld [vmem:[%s1424_s9 + $0xc4] sm:$0xf]  ;;  %v1089_v49 = vld [vmem:[%s1424_s9 + $0xc8] sm:$0xf0] }
  0x20   : > { %485 = vmatpush.bf16.msra.mxu0 %v1211_v15  ;;  %1220 = vmatpush.bf16.msra.mxu2 %v1211_v15  ;;  %v1020_v50 = vor.u32 %v1181_v46, %v1017_v47  ;;  %v1007_v51 = vld [vmem:[%s1424_s9 + $0x20] sm:$0xf]  ;;  %v1180_v52 = vld [vmem:[%s1424_s9 + $0x24] sm:$0xf0]  ;;  %v1092_v55 = vor.u32 %v1199_v48, %v1089_v49  ;;  %v1183_v58 = vld [vmem:[%s1424_s9 + $0x44] sm:$0xf] }
  0x21   : > { %1153 = vmatmul.msk.bf16.vlgmr.msra.gmra.mxu1 %vm426_vm2, %v996_v14  ;;  %1162 = vmatmul.msk.bf16.vlgmr.msra.gmra.mxu3 %vm426_vm2, %v1068_v17  ;;  %v1071_v53 = vld [vmem:[%s1424_s9 + $0xa0] sm:$0xf]  ;;  %v1196_v54 = vld [vmem:[%s1424_s9 + $0xa4] sm:$0xf0]  ;;  %v1008_v56 = vor.u32 %v1180_v52, %v1007_v51  ;;  %v1025_v59 = vld [vmem:[%s1424_s9 + $0x48] sm:$0xf0] }
  0x22   : > { %v1072_v57 = vor.u32 %v1196_v54, %v1071_v53  ;;  %v1201_v60 = vld [vmem:[%s1424_s9 + $0xd4] sm:$0xf]  ;;  %v1097_v61 = vld [vmem:[%s1424_s9 + $0xd8] sm:$0xf0]  ;;  %v1028_v62 = vor.u32 %v1183_v58, %v1025_v59  ;;  %v1015_v63 = vld [vmem:[%s1424_s9 + $0x30] sm:$0xf] }
  0x23   : > { %v1182_v0 = vld [vmem:[%s1424_s9 + $0x34] sm:$0xf0]  ;;  %v1079_v1 = vld [vmem:[%s1424_s9 + $0xb0] sm:$0xf]  ;;  %v1100_v3 = vor.u32 %v1201_v60, %v1097_v61  ;;  %v1185_v6 = vld [vmem:[%s1424_s9 + $0x54] sm:$0xf] }
  0x24   : > { %486 = vmatpush.bf16.msra.mxu0 %v1210_v18  ;;  %1221 = vmatpush.bf16.msra.mxu2 %v1210_v18  ;;  %v1198_v2 = vld [vmem:[%s1424_s9 + $0xb4] sm:$0xf0]  ;;  %v1016_v4 = vor.u32 %v1182_v0, %v1015_v63  ;;  %v1033_v7 = vld [vmem:[%s1424_s9 + $0x58] sm:$0xf0]  ;;  %v1203_v8 = vld [vmem:[%s1424_s9 + $0xe4] sm:$0xf] }
  0x25   : > { %v1080_v5 = vor.u32 %v1198_v2, %v1079_v1  ;;  %v1105_v9 = vld [vmem:[%s1424_s9 + $0xe8] sm:$0xf0]  ;;  %v1036_v10 = vor.u32 %v1185_v6, %v1033_v7  ;;  %v1023_v11 = vld [vmem:[%s1424_s9 + $0x40] sm:$0xf]  ;;  %v1184_v12 = vld [vmem:[%s1424_s9 + $0x44] sm:$0xf0] }
  0x26   : > { %v1087_v13 = vld [vmem:[%s1424_s9 + $0xc0] sm:$0xf]  ;;  %v1200_v14 = vld [vmem:[%s1424_s9 + $0xc4] sm:$0xf0]  ;;  %v1108_v15 = vor.u32 %v1203_v8, %v1105_v9  ;;  %v1024_v16 = vor.u32 %v1184_v12, %v1023_v11  ;;  %v1187_v18 = vld [vmem:[%s1424_s9 + $0x64] sm:$0xf] }
  0x27   : > { %v1088_v17 = vor.u32 %v1200_v14, %v1087_v13  ;;  %v1113_v21 = vld [vmem:[%s1424_s9 + $0xf8] sm:$0xf0]  ;;  %v1031_v23 = vld [vmem:[%s1424_s9 + $0x50] sm:$0xf]  ;;  %v1186_v24 = vld [vmem:[%s1424_s9 + $0x54] sm:$0xf0] }
  0x28   : > { %487 = vmatpush.bf16.msra.mxu0 %v1209_v19  ;;  %1222 = vmatpush.bf16.msra.mxu2 %v1209_v19  ;;  %v1041_v19 = vld [vmem:[%s1424_s9 + $0x68] sm:$0xf0]  ;;  %v1032_v28 = vor.u32 %v1186_v24, %v1031_v23  ;;  %v1189_v30 = vld [vmem:[%s1424_s9 + $0x74] sm:$0xf]  ;;  %v1188_v34 = vld [vmem:[%s1424_s9 + $0x64] sm:$0xf0] }
  0x29   : > { %v1044_v22 = vor.u32 %v1187_v18, %v1041_v19  ;;  %v1103_v35 = vld [vmem:[%s1424_s9 + $0xe0] sm:$0xf]  ;;  %v1204_v36 = vld [vmem:[%s1424_s9 + $0xe4] sm:$0xf0]  ;;  %v1191_v39 = vld [vmem:[%s1424_s9 + $0x84] sm:$0xf] }
  0x2a   : > { %v1057_v40 = vld [vmem:[%s1424_s9 + $0x88] sm:$0xf0]  ;;  %v1047_v42 = vld [vmem:[%s1424_s9 + $0x70] sm:$0xf]  ;;  %v1206_v46 = vld [vmem:[%s1424_s9 + $0xf4] sm:$0xf0] }
  0x2b   : > { %v1060_v41 = vor.u32 %v1191_v39, %v1057_v40  ;;  %v1336_v53 = vmov 0.0   ;;  %v1529_v54 = vld [vmem:[%s1709_s2] ss:$0 sm:$0xff] }
  0x2c   : > { %488 = vmatpush.bf16.msra.mxu0 %v1208_v20  ;;  %1223 = vmatpush.bf16.msra.mxu2 %v1208_v20  ;;  %v1205_v20 = vld [vmem:[%s1424_s9 + $0xf4] sm:$0xf]  ;;  %808 = vst [vmem:[#allocation3] sm:$0x1] %v1336_v53 }
  0x2d   : > { %v1116_v27 = vor.u32 %v1205_v20, %v1113_v21  ;;  %809 = vst [vmem:[#allocation3 + $0x18] sm:$0x1] %v1336_v53 }
  0x2e   : > { %810 = vst [vmem:[#allocation3 + $0x30] sm:$0x1] %v1336_v53 }
  0x2f   : > { %811 = vst [vmem:[#allocation3 + $0x48] sm:$0x1] %v1336_v53 }
  0x30   : > { %489 = vmatpush.bf16.msra.mxu0 %v1207_v26  ;;  %1224 = vmatpush.bf16.msra.mxu2 %v1207_v26  ;;  %v1202_v26 = vld [vmem:[%s1424_s9 + $0xd4] sm:$0xf0]  ;;  %812 = vst [vmem:[#allocation3 + $0x60] sm:$0x1] %v1336_v53 }
  0x31   : > { %1154 = vmatmul.msk.bf16.gmra.mxu1 %vm426_vm2, %v1004_v25  ;;  %1163 = vmatmul.msk.bf16.gmra.mxu3 %vm426_vm2, %v1076_v31  ;;  %v1095_v25 = vld [vmem:[%s1424_s9 + $0xd0] sm:$0xf]  ;;  %v1049_v31 = vld [vmem:[%s1424_s9 + $0x78] sm:$0xf0]  ;;  %813 = vst [vmem:[#allocation3 + $0x78] sm:$0x1] %v1336_v53 }
  0x32   : > { %v1096_v29 = vor.u32 %v1202_v26, %v1095_v25  ;;  %814 = vst [vmem:[#allocation3 + $0x90] sm:$0x1] %v1336_v53 }
  0x33   : > { %490 = vmatmul.bf16.vlgmr.msra.gmra.mxu0 %v992_v32  ;;  %530 = vmatmul.bf16.vlgmr.msra.gmra.mxu2 %v1056_v33  ;;  %v1052_v32 = vor.u32 %v1189_v30, %v1049_v31  ;;  %v1039_v33 = vld [vmem:[%s1424_s9 + $0x60] sm:$0xf]  ;;  %815 = vst [vmem:[#allocation3 + $0xa8] sm:$0x1] %v1336_v53 }
  0x34   : > { %v1040_v37 = vor.u32 %v1188_v34, %v1039_v33 }
  0x41   : > { %1155 = vmatmul.msk.bf16.gmra.mxu1 %vm426_vm2, %v1012_v38  ;;  %1164 = vmatmul.msk.bf16.gmra.mxu3 %vm426_vm2, %v1084_v43  ;;  %v1104_v38 = vor.u32 %v1204_v36, %v1103_v35  ;;  %v1190_v43 = vld [vmem:[%s1424_s9 + $0x74] sm:$0xf0] }
  0x42   : > { %v1048_v47 = vor.u32 %v1190_v43, %v1047_v42 }
  0x43   : > { %495 = vmatmul.bf16.gmra.mxu0 %v1000_v44  ;;  %535 = vmatmul.bf16.gmra.mxu2 %v1064_v45  ;;  %v1111_v45 = vld [vmem:[%s1424_s9 + $0xf0] sm:$0xf]  ;;  %s1216_s9 = sshll.u32 %s1380_s16, 6 }
  0x44   : > { %v1112_v48 = vor.u32 %v1206_v46, %v1111_v45  ;;  %s916_s17 = scalar_lea.hbm %s1710_s3, %s1216_s9 }
  0x45   : > { %s919_s16 = sshll.u32 %s916_s17, 4  ;;  %s920_s16 = int_to_ptr.hbm [resolvable:$true] %s919_s16 }
  0x46   : > { %s1285_s24 = sshra.s32 %s920_s16, 4  ;;  %s1286_s24 = int_to_ptr.hbm [resolvable:$true] %s1285_s24 }
  0x47   : > { %s1287_s25 = scalar_lea.hbm %s1286_s24, 64  ;;  %p1292_p0 = scmp.lt.s32.totalorder %s1286_s24, %s1710_s3 }
  0x48   : > { %p1288_p11 = scmp.ne.s32.totalorder %s1286_s24, %s1287_s25  ;;  %p1293_p1 = scmp.lt.s32.totalorder %s1291_s28, %s1287_s25 }
  0x4a   : > { %p1289_p12 = pnand %p1288_p11, %p1397_p5  ;;  %p1294_p2 = por %p1293_p1, %p1292_p0 }
  0x4c   : > { %p1290_p13 = pneg %p1289_p12 }
  0x4e   : > { %p1295_p3 = pnand %p1294_p2, %p1290_p13 }
  0x51   : > { %1156 = vmatmul.msk.bf16.gmra.mxu1 %vm426_vm2, %v1020_v50  ;;  %1165 = vmatmul.msk.bf16.gmra.mxu3 %vm426_vm2, %v1092_v55 }
  0x53   : > { %500 = vmatmul.bf16.gmra.mxu0 %v1008_v56  ;;  %540 = vmatmul.bf16.gmra.mxu2 %v1072_v57 }
  0x61   : > { %1157 = vmatmul.msk.bf16.gmra.mxu1 %vm426_vm2, %v1028_v62  ;;  %1166 = vmatmul.msk.bf16.gmra.mxu3 %vm426_vm2, %v1100_v3 }
  0x63   : > { %505 = vmatmul.bf16.gmra.mxu0 %v1016_v4  ;;  %545 = vmatmul.bf16.gmra.mxu2 %v1080_v5 }
  0x71   : > { %1158 = vmatmul.msk.bf16.gmra.mxu1 %vm426_vm2, %v1036_v10  ;;  %1167 = vmatmul.msk.bf16.gmra.mxu3 %vm426_vm2, %v1108_v15 }
  0x73   : > { %510 = vmatmul.bf16.gmra.mxu0 %v1024_v16  ;;  %550 = vmatmul.bf16.gmra.mxu2 %v1088_v17 }
  0x81   : > { %1159 = vmatmul.msk.bf16.gmra.mxu1 %vm426_vm2, %v1044_v22  ;;  %1168 = vmatmul.msk.bf16.gmra.mxu3 %vm426_vm2, %v1116_v27 }
  0x83   : > { %515 = vmatmul.bf16.gmra.mxu0 %v1032_v28  ;;  %555 = vmatmul.bf16.gmra.mxu2 %v1096_v29 }
  0x91   : > { %1160 = vmatmul.msk.bf16.gmra.mxu1 %vm426_vm2, %v1052_v32 }
  0x93   : > { %520 = vmatmul.bf16.gmra.mxu0 %v1040_v37  ;;  %560 = vmatmul.bf16.gmra.mxu2 %v1104_v38 }
  0x9e   : > { %v580_v44 = vpop.f32.mrf.mxu1 }
  0xa1   : > { %1161 = vmatmul.msk.bf16.gmra.mxu1 %vm426_vm2, %v1060_v41 }
  0xa3   : > { %525 = vmatmul.bf16.gmra.mxu0 %v1048_v47  ;;  %565 = vmatmul.bf16.gmra.mxu2 %v1112_v48 }
  0xa4   : > { %v1524_v51 = vpop.f32.mrf.mxu3 }
  0xa6   : > { %v582_v49 = vpop.f32.mrf.mxu1 }
  0xac   : > { %v1534_v59 = vpop.f32.mrf.mxu3 }
  0xae   : > { %v585_v50 = vpop.f32.mrf.mxu1 }
  0xb0   : > { %v491_v52 = vpop.f32.mrf.mxu0 }
  0xb1   : > { %v492_v58 = vadd.f32 %v1529_v54, %v491_v52 }
  0xb3   : > { %v581_v60 = vadd.f32 %v580_v44, %v492_v58 }
  0xb4   : > { %v630_v4 = vpop.f32.mrf.mxu3 }
  0xb5   : > { %v660_v0 = vmax.f32 %v581_v60, 0.0 }
  0xb6   : > { %v587_v55 = vpop.f32.mrf.mxu1  ;;  %v1531_v56 = vpop.f32.mrf.mxu2 }
  0xb7   : > { %v776_v5 = vmax.f32 %v660_v0, 0.0 }
  0xb8   : > { %v493_v57 = vpop.f32.mrf.mxu0 }
  0xb9   : > { %v494_v1 = vadd.f32 %v1529_v54, %v493_v57 }
  0xbb   : > { %v583_v6 = vadd.f32 %v582_v49, %v494_v1 }
  0xbc   : > { %v632_v18 = vpop.f32.mrf.mxu3 }
  0xbd   : > { %v661_v12 = vmax.f32 %v583_v6, 0.0 }
  0xbe   : > { %v590_v61 = vpop.f32.mrf.mxu1  ;;  %v1536_v62 = vpop.f32.mrf.mxu2 }
  0xbf   : > { %v777_v15 = vmax.f32 %v661_v12, 0.0 }
  0xc0   : > { %v496_v63 = vpop.f32.mrf.mxu0 }
  0xc1   : > { %v497_v2 = vadd.f32 %v1529_v54, %v496_v63 }
  0xc3   : > { %v586_v3 = vadd.f32 %v585_v50, %v497_v2 }
  0xc4   : > { %v635_v24 = vpop.f32.mrf.mxu3 }
  0xc5   : > { %v662_v7 = vmax.f32 %v586_v3, 0.0 }
  0xc6   : > { %v592_v8 = vpop.f32.mrf.mxu1  ;;  %v536_v10 = vpop.f32.mrf.mxu2 }
  0xc7   : > { %v792_v9 = vmax.f32 %v776_v5, %v662_v7  ;;  %v537_v41 = vadd.f32 %v1529_v54, %v536_v10 }
  0xc8   : > { %v498_v11 = vpop.f32.mrf.mxu0 }
  0xc9   : > { %816 = vst [vmem:[#allocation3 + $0x1] sm:$0xff] %v792_v9  ;;  %v499_v13 = vadd.f32 %v1529_v54, %v498_v11  ;;  %v1561_v48 = vadd.f32 %v1524_v51, %v537_v41 }
  0xcb   : > { %v588_v14 = vadd.f32 %v587_v55, %v499_v13 }
  0xcc   : > { %v637_v40 = vpop.f32.mrf.mxu3 }
  0xcd   : > { %v663_v16 = vmax.f32 %v588_v14, 0.0 }
  0xce   : > { %v595_v17 = vpop.f32.mrf.mxu1  ;;  %v538_v20 = vpop.f32.mrf.mxu2 }
  0xcf   : > { %v793_v19 = vmax.f32 %v777_v15, %v663_v16  ;;  %v539_v63 = vadd.f32 %v1529_v54, %v538_v20 }
  0xd0   : > { %v501_v21 = vpop.f32.mrf.mxu0 }
  0xd1   : > { %817 = vst [vmem:[#allocation3 + $0x9] sm:$0xff] %v793_v19  ;;  %v502_v29 = vadd.f32 %v1529_v54, %v501_v21 }
  0xd3   : > { %v591_v32 = vadd.f32 %v590_v61, %v502_v29  ;;  %v678_v61 = vmax.f32 %v1561_v48, 0.0 }
  0xd4   : > { %v640_v1 = vpop.f32.mrf.mxu3 }
  0xd5   : > { %v664_v37 = vmax.f32 %v591_v32, 0.0 }
  0xd6   : > { %v597_v22 = vpop.f32.mrf.mxu1  ;;  %v541_v23 = vpop.f32.mrf.mxu2 }
  0xd7   : > { %v542_v35 = vadd.f32 %v1529_v54, %v541_v23  ;;  %v778_v44 = vmax.f32 %v662_v7, %v664_v37 }
  0xd8   : > { %v832_v25 = vld [vmem:[#allocation3] ss:$2 sm:$0xff]  ;;  %v848_v26 = vld [vmem:[#allocation3 + $0x1] ss:$2 sm:$0xff]  ;;  %v503_v27 = vpop.f32.mrf.mxu0 }
  0xd9   : > { %v879_v28 = vmax.f32 %v832_v25, %v848_v26  ;;  %v864_v30 = vld [vmem:[#allocation3 + $0x2] ss:$2 sm:$0xff]  ;;  %v504_v38 = vadd.f32 %v1529_v54, %v503_v27  ;;  %v631_v43 = vadd.f32 %v630_v4, %v542_v35 }
  0xdb   : > { %v887_v31 = vmax.f32 %v879_v28, %v864_v30  ;;  %v593_v45 = vadd.f32 %v592_v8, %v504_v38  ;;  %v680_v52 = vmax.f32 %v631_v43, 0.0  ;;  %v1579_v8 = vadd.f32 %v1534_v59, %v539_v63 }
  0xdc   : > { %v642_v19 = vpop.f32.mrf.mxu3 }
  0xdd   : > { %896 = vst.msk [vmem:[%s1547_s8] sm:$0xff] %vm895_vm3, %v887_v31  ;;  %v665_v58 = vmax.f32 %v593_v45, 0.0  ;;  %v786_v2 = vmax.f32 %v678_v61, %v680_v52  ;;  %v679_v15 = vmax.f32 %v1579_v8, 0.0 }
  0xde   : > { %v1545_v33 = vpop.f32.mrf.mxu1  ;;  %v543_v34 = vpop.f32.mrf.mxu2 }
  0xdf   : > { %v544_v53 = vadd.f32 %v1529_v54, %v543_v34  ;;  %v779_v5 = vmax.f32 %v663_v16, %v665_v58 }
  0xe0   : > { %v506_v36 = vpop.f32.mrf.mxu0 }
  0xe1   : > { %v507_v39 = vadd.f32 %v1529_v54, %v506_v36  ;;  %v633_v3 = vadd.f32 %v632_v18, %v544_v53 }
  0xe3   : > { %v1555_v42 = vadd.f32 %v595_v17, %v507_v39  ;;  %v681_v12 = vmax.f32 %v633_v3, 0.0 }
  0xe4   : > { %v645_v32 = vpop.f32.mrf.mxu3 }
  0xe5   : > { %v666_v46 = vmax.f32 %v1555_v42, 0.0  ;;  %v787_v59 = vmax.f32 %v679_v15, %v681_v12 }
  0xe6   : > { %v1558_v47 = vpop.f32.mrf.mxu1  ;;  %v546_v50 = vpop.f32.mrf.mxu2 }
  0xe7   : > { %v794_v49 = vmax.f32 %v778_v44, %v666_v46  ;;  %v547_v55 = vadd.f32 %v1529_v54, %v546_v50 }
  0xe8   : > { %v508_v57 = vpop.f32.mrf.mxu0 }
  0xe9   : > { %818 = vst [vmem:[#allocation3 + $0x19] sm:$0xff] %v794_v49  ;;  %v509_v60 = vadd.f32 %v1529_v54, %v508_v57  ;;  %v1570_v51 = vadd.f32 %v635_v24, %v547_v55 }
  0xeb   : > { %v1572_v0 = vadd.f32 %v597_v22, %v509_v60  ;;  %v682_v4 = vmax.f32 %v1570_v51, 0.0 }
  0xed   : > { %v667_v6 = vmax.f32 %v1572_v0, 0.0  ;;  %v802_v9 = vmax.f32 %v786_v2, %v682_v4 }
  0xee   : > { %v605_v7 = vpop.f32.mrf.mxu1  ;;  %v548_v11 = vpop.f32.mrf.mxu2 }
  0xef   : > { %v795_v10 = vmax.f32 %v779_v5, %v667_v6  ;;  %826 = vst [vmem:[#allocation3 + $0x79] sm:$0xff] %v802_v9  ;;  %v549_v13 = vadd.f32 %v1529_v54, %v548_v11 }
  0xf0   : > { %v511_v14 = vpop.f32.mrf.mxu0 }
  0xf1   : > { %819 = vst [vmem:[#allocation3 + $0x21] sm:$0xff] %v795_v10  ;;  %v1587_v16 = vadd.f32 %v637_v40, %v549_v13  ;;  %v512_v26 = vadd.f32 %v1529_v54, %v511_v14 }
  0xf3   : > { %v683_v17 = vmax.f32 %v1587_v16, 0.0  ;;  %v601_v29 = vadd.f32 %v1545_v33, %v512_v26 }
  0xf5   : > { %v803_v20 = vmax.f32 %v787_v59, %v683_v17  ;;  %v668_v39 = vmax.f32 %v601_v29, 0.0 }
  0xf6   : > { %v607_v18 = vpop.f32.mrf.mxu1  ;;  %v551_v21 = vpop.f32.mrf.mxu2 }
  0xf7   : > { %827 = vst [vmem:[#allocation3 + $0x81] sm:$0xff] %v803_v20  ;;  %v552_v36 = vadd.f32 %v1529_v54, %v551_v21  ;;  %v780_v49 = vmax.f32 %v666_v46, %v668_v39 }
  0xf8   : > { %v834_v22 = vld [vmem:[#allocation3 + $0x18] ss:$2 sm:$0xff]  ;;  %v850_v23 = vld [vmem:[#allocation3 + $0x19] ss:$2 sm:$0xff]  ;;  %v513_v24 = vpop.f32.mrf.mxu0 }
  0xf9   : > { %v880_v25 = vmax.f32 %v834_v22, %v850_v23  ;;  %v866_v27 = vld [vmem:[#allocation3 + $0x1a] ss:$2 sm:$0xff]  ;;  %v514_v40 = vadd.f32 %v1529_v54, %v513_v24  ;;  %v641_v45 = vadd.f32 %v640_v1, %v552_v36 }
  0xfb   : > { %v888_v28 = vmax.f32 %v880_v25, %v866_v27  ;;  %v603_v50 = vadd.f32 %v1558_v47, %v514_v40  ;;  %v684_v58 = vmax.f32 %v641_v45, 0.0  ;;  %v647_v47 = vpop.f32.mrf.mxu3 }
  0xfd   : > { %897 = vst.msk [vmem:[%s1547_s8 + $0x8] sm:$0xff] %vm895_vm3, %v888_v28  ;;  %v669_v42 = vmax.f32 %v603_v50, 0.0  ;;  %v788_v5 = vmax.f32 %v682_v4, %v684_v58 }
  0xfe   : > { %v610_v30 = vpop.f32.mrf.mxu1  ;;  %v553_v31 = vpop.f32.mrf.mxu2  ;;  %v842_v34 = vld [vmem:[#allocation3 + $0x78] ss:$2 sm:$0xff]  ;;  %v858_v35 = vld [vmem:[#allocation3 + $0x79] ss:$2 sm:$0xff] }
  0xff   : > { %v884_v38 = vmax.f32 %v842_v34, %v858_v35  ;;  %v874_v43 = vld [vmem:[#allocation3 + $0x7a] ss:$2 sm:$0xff]  ;;  %v554_v60 = vadd.f32 %v1529_v54, %v553_v31  ;;  %v781_v10 = vmax.f32 %v667_v6, %v669_v42  ;;  %v532_v34 = vadd.f32 %v1529_v54, %v1531_v56 }
 0x100   : > { %v516_v37 = vpop.f32.mrf.mxu0 }
 0x101   : > { %v517_v41 = vadd.f32 %v1529_v54, %v516_v37  ;;  %v892_v44 = vmax.f32 %v884_v38, %v874_v43 }
 0x103   : > { %v1601_v33 = vadd.f32 %v605_v7, %v517_v41  ;;  %901 = vst.msk [vmem:[%s1547_s8 + $0x28] sm:$0xff] %vm895_vm3, %v892_v44  ;;  %v643_v7 = vadd.f32 %v642_v19, %v554_v60  ;;  %v650_v0 = vpop.f32.mrf.mxu3 }
 0x105   : > { %v670_v52 = vmax.f32 %v1601_v33, 0.0 }
 0x106   : > { %v1607_v53 = vpop.f32.mrf.mxu1  ;;  %v556_v57 = vpop.f32.mrf.mxu2 }
 0x107   : > { %v796_v55 = vmax.f32 %v780_v49, %v670_v52  ;;  %v557_v63 = vadd.f32 %v1529_v54, %v556_v57 }
 0x108   : > { %v518_v1 = vpop.f32.mrf.mxu0 }
 0x109   : > { %820 = vst [vmem:[#allocation3 + $0x31] sm:$0xff] %v796_v55  ;;  %v519_v46 = vadd.f32 %v1529_v54, %v518_v1  ;;  %v1616_v2 = vadd.f32 %v645_v32, %v557_v63  ;;  %v534_v1 = vadd.f32 %v1529_v54, %v1536_v62 }
 0x10b   : > { %v1618_v3 = vadd.f32 %v607_v18, %v519_v46  ;;  %v686_v9 = vmax.f32 %v1616_v2, 0.0  ;;  %v685_v18 = vmax.f32 %v643_v7, 0.0  ;;  %v652_v16 = vpop.f32.mrf.mxu3 }
 0x10d   : > { %v671_v11 = vmax.f32 %v1618_v3, 0.0  ;;  %v804_v13 = vmax.f32 %v788_v5, %v686_v9  ;;  %v789_v6 = vmax.f32 %v683_v17, %v685_v18 }
 0x10e   : > { %v615_v12 = vpop.f32.mrf.mxu1  ;;  %v558_v59 = vpop.f32.mrf.mxu2 }
 0x10f   : > { %v797_v14 = vmax.f32 %v781_v10, %v671_v11  ;;  %828 = vst [vmem:[#allocation3 + $0x91] sm:$0xff] %v804_v13  ;;  %v559_v51 = vadd.f32 %v1529_v54, %v558_v59 }
 0x110   : > { %v521_v4 = vpop.f32.mrf.mxu0 }
 0x111   : > { %821 = vst [vmem:[#allocation3 + $0x39] sm:$0xff] %v797_v14  ;;  %v1631_v19 = vadd.f32 %v647_v47, %v559_v51  ;;  %v522_v26 = vadd.f32 %v1529_v54, %v521_v4 }
 0x113   : > { %v687_v20 = vmax.f32 %v1631_v19, 0.0  ;;  %v611_v32 = vadd.f32 %v610_v30, %v522_v26  ;;  %v655_v47 = vpop.f32.mrf.mxu3 }
 0x115   : > { %v805_v22 = vmax.f32 %v789_v6, %v687_v20  ;;  %v672_v38 = vmax.f32 %v611_v32, 0.0 }
 0x116   : > { %v617_v21 = vpop.f32.mrf.mxu1  ;;  %v561_v23 = vpop.f32.mrf.mxu2 }
 0x117   : > { %829 = vst [vmem:[#allocation3 + $0x99] sm:$0xff] %v805_v22  ;;  %v562_v39 = vadd.f32 %v1529_v54, %v561_v23  ;;  %v782_v56 = vmax.f32 %v670_v52, %v672_v38 }
 0x118   : > { %v836_v24 = vld [vmem:[#allocation3 + $0x30] ss:$2 sm:$0xff]  ;;  %v852_v25 = vld [vmem:[#allocation3 + $0x31] ss:$2 sm:$0xff]  ;;  %v523_v27 = vpop.f32.mrf.mxu0 }
 0x119   : > { %v881_v28 = vmax.f32 %v836_v24, %v852_v25  ;;  %v868_v29 = vld [vmem:[#allocation3 + $0x32] ss:$2 sm:$0xff]  ;;  %v524_v43 = vadd.f32 %v1529_v54, %v523_v27  ;;  %v651_v55 = vadd.f32 %v650_v0, %v562_v39 }
 0x11b   : > { %v889_v31 = vmax.f32 %v881_v28, %v868_v29  ;;  %v613_v57 = vadd.f32 %v1607_v53, %v524_v43  ;;  %v688_v7 = vmax.f32 %v651_v55, 0.0 }
 0x11d   : > { %898 = vst.msk [vmem:[%s1547_s8 + $0x10] sm:$0xff] %vm895_vm3, %v889_v31  ;;  %v790_v18 = vmax.f32 %v686_v9, %v688_v7  ;;  %v657_v9 = vpop.f32.mrf.mxu3 }
 0x11e   : > { %v620_v17 = vpop.f32.mrf.mxu1  ;;  %v563_v35 = vpop.f32.mrf.mxu2  ;;  %v844_v36 = vld [vmem:[#allocation3 + $0x90] ss:$2 sm:$0xff]  ;;  %v860_v37 = vld [vmem:[#allocation3 + $0x91] ss:$2 sm:$0xff] }
 0x11f   : > { %v885_v41 = vmax.f32 %v844_v36, %v860_v37  ;;  %v621_v44 = vadd.f32 %v620_v17, %v532_v34  ;;  %v876_v45 = vld [vmem:[#allocation3 + $0x92] ss:$2 sm:$0xff]  ;;  %v564_v10 = vadd.f32 %v1529_v54, %v563_v35 }
 0x120   : > { %v526_v40 = vpop.f32.mrf.mxu0 }
 0x121   : > { %v527_v30 = vadd.f32 %v1529_v54, %v526_v40  ;;  %v893_v49 = vmax.f32 %v885_v41, %v876_v45  ;;  %v676_v58 = vmax.f32 %v621_v44, 0.0  ;;  %v653_v51 = vadd.f32 %v652_v16, %v564_v10 }
 0x123   : > { %v616_v50 = vadd.f32 %v615_v12, %v527_v30  ;;  %902 = vst.msk [vmem:[%s1547_s8 + $0x30] sm:$0xff] %vm895_vm3, %v893_v49  ;;  %v673_v12 = vmax.f32 %v613_v57, 0.0  ;;  %v689_v25 = vmax.f32 %v653_v51, 0.0 }
 0x125   : > { %v674_v60 = vmax.f32 %v616_v50, 0.0  ;;  %v783_v0 = vmax.f32 %v671_v11, %v673_v12  ;;  %v791_v3 = vmax.f32 %v687_v20, %v689_v25 }
 0x126   : > { %v622_v63 = vpop.f32.mrf.mxu1  ;;  %v566_v5 = vpop.f32.mrf.mxu2 }
 0x127   : > { %v784_v42 = vmax.f32 %v674_v60, %v676_v58  ;;  %v798_v46 = vmax.f32 %v782_v56, %v674_v60  ;;  %v567_v33 = vadd.f32 %v1529_v54, %v566_v5  ;;  %v623_v13 = vadd.f32 %v622_v63, %v534_v1 }
 0x128   : > { %v528_v52 = vpop.f32.mrf.mxu0 }
 0x129   : > { %v800_v53 = vmax.f32 %v784_v42, %v678_v61  ;;  %822 = vst [vmem:[#allocation3 + $0x49] sm:$0xff] %v798_v46  ;;  %v529_v14 = vadd.f32 %v1529_v54, %v528_v52  ;;  %v656_v59 = vadd.f32 %v655_v47, %v567_v33  ;;  %v677_v6 = vmax.f32 %v623_v13, 0.0 }
 0x12b   : > { %824 = vst [vmem:[#allocation3 + $0x61] sm:$0xff] %v800_v53  ;;  %v618_v62 = vadd.f32 %v617_v21, %v529_v14  ;;  %v690_v4 = vmax.f32 %v656_v59, 0.0 }
 0x12d   : > { %v675_v22 = vmax.f32 %v618_v62, 0.0  ;;  %v806_v23 = vmax.f32 %v790_v18, %v690_v4 }
 0x12e   : > { %v568_v24 = vpop.f32.mrf.mxu2 }
 0x12f   : > { %v785_v48 = vmax.f32 %v675_v22, %v677_v6  ;;  %v799_v61 = vmax.f32 %v783_v0, %v675_v22  ;;  %830 = vst [vmem:[#allocation3 + $0xa9] sm:$0xff] %v806_v23  ;;  %v569_v26 = vadd.f32 %v1529_v54, %v568_v24 }
 0x131   : > { %v801_v2 = vmax.f32 %v785_v48, %v679_v15  ;;  %823 = vst [vmem:[#allocation3 + $0x51] sm:$0xff] %v799_v61  ;;  %v658_v21 = vadd.f32 %v657_v9, %v569_v26 }
 0x133   : > { %825 = vst [vmem:[#allocation3 + $0x69] sm:$0xff] %v801_v2  ;;  %v691_v11 = vmax.f32 %v658_v21, 0.0 }
 0x135   : > { %v807_v27 = vmax.f32 %v791_v3, %v691_v11 }
 0x137   : > { %831 = vst [vmem:[#allocation3 + $0xb1] sm:$0xff] %v807_v27 }
 0x138   : > { %v838_v28 = vld [vmem:[#allocation3 + $0x48] ss:$2 sm:$0xff]  ;;  %v854_v29 = vld [vmem:[#allocation3 + $0x49] ss:$2 sm:$0xff] }
 0x139   : > { %v882_v31 = vmax.f32 %v838_v28, %v854_v29  ;;  %v870_v15 = vld [vmem:[#allocation3 + $0x4a] ss:$2 sm:$0xff] }
 0x13a   : > { %v840_v54 = vld [vmem:[#allocation3 + $0x60] ss:$2 sm:$0xff]  ;;  %v856_v8 = vld [vmem:[#allocation3 + $0x61] ss:$2 sm:$0xff] }
 0x13b   : > { %v883_v32 = vmax.f32 %v840_v54, %v856_v8  ;;  %v890_v16 = vmax.f32 %v882_v31, %v870_v15  ;;  %v872_v17 = vld [vmem:[#allocation3 + $0x62] ss:$2 sm:$0xff] }
 0x13d   : > { %v891_v19 = vmax.f32 %v883_v32, %v872_v17  ;;  %899 = vst.msk [vmem:[%s1547_s8 + $0x18] sm:$0xff] %vm895_vm3, %v890_v16 }
 0x13e   : > { %v846_v20 = vld [vmem:[#allocation3 + $0xa8] ss:$2 sm:$0xff]  ;;  %v862_v34 = vld [vmem:[#allocation3 + $0xa9] ss:$2 sm:$0xff] }
 0x13f   : > { %900 = vst.msk [vmem:[%s1547_s8 + $0x20] sm:$0xff] %vm895_vm3, %v891_v19  ;;  %v886_v35 = vmax.f32 %v846_v20, %v862_v34  ;;  %v878_v36 = vld [vmem:[#allocation3 + $0xaa] ss:$2 sm:$0xff] }
 0x141   : > { %v894_v37 = vmax.f32 %v886_v35, %v878_v36 }
 0x143   : > { %903 = vst.msk [vmem:[%s1547_s8 + $0x38] sm:$0xff] %vm895_vm3, %v894_v37 }
 0x144   : > { %1298 = shalt.err (!%p1295_p3)
}
 0x145   : > { %s1337_s4 = smov 128   ;;  %s1338_s5 = smov 8  }
 0x146   : > { %1227 = dma.vmem_to_hbm [thread:$0]  (%p1397_p5), %s918_s19, 1024, %s920_s16, %s905_s20, %s1337_s4, %s1337_s4, %s1338_s5  }
 0x147 PF: > { %p1233_p4 = scmp.ge.s32.totalorder %s1333_s15, 2  ;;  %s934_s6 = sand.u32 1, %s1321_s12  }
 0x148   : > { %s935_s7 = scalar_lea.sflag [#allocation5], %s934_s6 }
 0x149   : > { %p1230_p7 = pnand %p1233_p4, %p1401_p6 }
 0x14b   : > { %p1231_p8 = pneg %p1230_p7 }
 0x14d   : > { %1316 = dma.done.wait (%p1231_p8), %s935_s7, 1024  }
 0x14e   : > { %1318 = vsyncadd (%p1231_p8), %s935_s7, 4294966272  ;;  %p13_p9 = scmp.ge.s32.totalorder %s1384_s18, 4   ;;  %s1713_s12 = smov %s1325_s13 }
 0x14f   : > { %s1714_s13 = smov %s1329_s14  ;;  %s1715_s14 = smov %s1395_s21 }
 0x150   : > { %s1716_s15 = smov %s1384_s18  ;;  %15 = sbr.rel (!%p13_p9) target bundleno = 3 (0x3), region = 92 }
 0x155   :  { %941 = vsyncpa [#allocation5], 1 }
 0x156   :  { %943 = vsyncpa [#allocation5 + $0x1], 1 }

</bundles_post_ra>
